<compile_context>
chip_gen: v7x
topology: tpu7x:2x2x1
jax: 0.10.0
libtpu: 0.0.40
codegen_flags: <defaults>
</compile_context>

<pallas_src>
import functools

import jax
import jax.numpy as jnp
from jax.experimental import pallas as pl
from jax.experimental.pallas import tpu as pltpu

LANE = 128


# ---------------------------------------------------------------------------
# Pallas kernel: fused MLP forward (tanh-tanh-tanh-linear), batch on lanes.
# ---------------------------------------------------------------------------
def _mlp_kernel(xT_ref,
                w1_ref, b1_ref,
                w2_ref, b2_ref,
                w3_ref, b3_ref,
                w4_ref, b4_ref,
                oT_ref,
                *, precision, use_bf16):
    xT = xT_ref[...]                              # [IN, TILE]  (batch on lanes)

    # Layer 1: tiny-K contraction, MXU pass is essentially free at H=32.
    h = jnp.tanh(
        jnp.dot(w1_ref[...], xT,                  # [H, IN] @ [IN, TILE]
                preferred_element_type=jnp.float32, precision=precision)
        + b1_ref[...])                            # [H, TILE]

    # Layers 2, 3: [H,H] @ [H,TILE] on the MXU, f32 accumulation.
    w2 = w2_ref[...]
    w3 = w3_ref[...]
    if use_bf16:                                  # optional v6e/v7x fast path
        h, w2, w3 = h.astype(jnp.bfloat16), w2.astype(jnp.bfloat16), w3.astype(jnp.bfloat16)
    h = jnp.tanh(jnp.dot(w2, h, preferred_element_type=jnp.float32,
                         precision=precision) + b2_ref[...])
    if use_bf16:
        h = h.astype(jnp.bfloat16)
    h = jnp.tanh(jnp.dot(w3, h, preferred_element_type=jnp.float32,
                         precision=precision) + b3_ref[...])

    # Head: [OUT, H] @ [H, TILE]; OUT=1 -> 1-row MXU matmul (free filler).
    y = jnp.dot(w4_ref[...], h.astype(jnp.float32),
                preferred_element_type=jnp.float32, precision=precision) + b4_ref[...]
    oT_ref[...] = y.astype(oT_ref.dtype)


# ---------------------------------------------------------------------------
# Wrapper: tile selection + layout plumbing + pallas_call.
# ---------------------------------------------------------------------------
def dnn_forward(x, params, *, batch_tile=8192, use_bf16=False,
                precision=jax.lax.Precision.HIGHEST):
    """Fused MLP forward pass with a Pallas TPU kernel.

    x:       [N, IN]  float32 (PyTorch layout)
    params:  dict with w1..w4 ([in,out] layout) and b1..b4 ([1,out])
    returns: [N, OUT] float32
    """
    n, in_dim = x.shape
    hidden = params["w1"].shape[1]
    out_dim = params["w4"].shape[1]

    # ---- tile selection -----------------------------------------------------
    batch_tile = max(LANE, (batch_tile // LANE) * LANE)    # lane-aligned cap
    cap_groups = batch_tile // LANE
    n_groups = -(-n // LANE)                               # batch in 128-lane groups
    # v7x has 2 TensorCores; with a >=2-step "parallel" grid both get work.
    min_steps = 2 if n_groups >= 2 else 1
    steps = max(min_steps, -(-n_groups // cap_groups))
    tile = (-(-n_groups // steps)) * LANE                  # <= batch_tile, lane aligned
    n_pad = steps * tile                                   # padding waste < steps*128 rows

    # Lane-dense layout: batch on the last (lane) axis -> unmasked output stores.
    # TODO(synk): this pad+transpose is one extra HBM round trip over x; it could
    # be folded into the input DMA (allow_input_fusion / in-kernel relayout), but
    # the kernel is EUP(tanh)-bound so the cost is a few percent at most.
    xT = jnp.pad(x, ((0, n_pad - n), (0, 0))).T            # [IN, n_pad]

    # Pre-transpose weights/biases in the wrapper (tiny, one-time cost).
    w1T = params["w1"].T                                    # [H, IN]
    b1c = params["b1"].T                                    # [H, 1]
    w2T = params["w2"].T                                    # [H, H]
    b2c = params["b2"].T                                    # [H, 1]
    w3T = params["w3"].T                                    # [H, H]
    b3c = params["b3"].T                                    # [H, 1]
    w4T = params["w4"].T                                    # [OUT, H]
    b4c = params["b4"].T                                    # [OUT, 1]

    def const_spec(shape):
        return pl.BlockSpec(shape, lambda i: (0, 0))        # same block every step

    # Advisory cost estimate for XLA's scheduler (flops / tanh / bytes).
    cost = pl.CostEstimate(
        flops=int(n_pad) * 2 * (in_dim * hidden + 2 * hidden * hidden
                                + hidden * out_dim),
        transcendentals=int(n_pad) * 3 * hidden,
        bytes_accessed=4 * (n_pad * (in_dim + out_dim)
                            + in_dim * hidden + 2 * hidden * hidden
                            + hidden * out_dim + 3 * hidden + out_dim),
    )

    kernel = functools.partial(_mlp_kernel, precision=precision, use_bf16=use_bf16)

    oT = pl.pallas_call(
        kernel,
        out_shape=jax.ShapeDtypeStruct((out_dim, n_pad), jnp.float32),
        grid_spec=pl.GridSpec(
            grid=(steps,),
            in_specs=[
                pl.BlockSpec((in_dim, tile), lambda i: (0, i)),          # xT tile
                const_spec((hidden, in_dim)), const_spec((hidden, 1)),   # layer 1
                const_spec((hidden, hidden)), const_spec((hidden, 1)),   # layer 2
                const_spec((hidden, hidden)), const_spec((hidden, 1)),   # layer 3
                const_spec((out_dim, hidden)), const_spec((out_dim, 1)), # head
            ],
            out_specs=pl.BlockSpec((out_dim, tile), lambda i: (0, i)),
        ),
        compiler_params=pltpu.CompilerParams(
            dimension_semantics=("parallel",)),
        cost_estimate=cost,
    )(xT, w1T, b1c, w2T, b2c, w3T, b3c, w4T, b4c)

    return oT[:, :n].T                                       # [N, OUT]


# ---------------------------------------------------------------------------
# Deterministic parameter construction (synthetic weights, no checkpoint load)
# ---------------------------------------------------------------------------
def init_params(key, in_dim, hidden, out_dim):
    ks = jax.random.split(key, 8)

    def glorot(k, fan_in, fan_out):
        lim = jnp.sqrt(6.0 / (fan_in + fan_out))
        return jax.random.uniform(k, (fan_in, fan_out), jnp.float32, -lim, lim)

    params = {
        "w1": glorot(ks[0], in_dim, hidden),
        "b1": jnp.zeros((1, hidden), jnp.float32),
        "w2": glorot(ks[1], hidden, hidden),
        "b2": jnp.zeros((1, hidden), jnp.float32),
        "w3": glorot(ks[2], hidden, hidden),
        "b3": jnp.zeros((1, hidden), jnp.float32),
        "w4": glorot(ks[3], hidden, out_dim),
        "b4": jnp.zeros((1, out_dim), jnp.float32),
    }
    # Scalar physics parameters registered by DNN.__init__ (unused in forward()).
    params["G"] = jnp.array([1.0], jnp.float32)
    params["k"] = jnp.array([1.0], jnp.float32)
    params["C_skv"] = jnp.array([1.0], jnp.float32)
    params["mu_h"] = jnp.array([1.0], jnp.float32)
    return params


def reference_forward(x, p):
    hi = jax.lax.Precision.HIGHEST
    h = jnp.tanh(jnp.dot(x, p["w1"], precision=hi) + p["b1"])
    h = jnp.tanh(jnp.dot(h, p["w2"], precision=hi) + p["b2"])
    h = jnp.tanh(jnp.dot(h, p["w3"], precision=hi) + p["b3"])
    return jnp.dot(h, p["w4"], precision=hi) + p["b4"]


# TODO(synk): loss_pde / loss_weights / loss_dirichlet / loss_operator need
# autograd w.r.t. the inputs (PINN residuals); those are gradient computations
# outside forward() and are left to jax.grad on top of dnn_forward.

if __name__ == "__main__":
    key = jax.random.PRNGKey(0)
    k_x, k_p = jax.random.split(key)

    N, IN_DIM, HIDDEN, OUT_DIM = 64, 2, 32, 1   # (t, x) -> p, PINN-style MLP
    x = jax.random.normal(k_x, (N, IN_DIM), jnp.float32)
    params = init_params(k_p, IN_DIM, HIDDEN, OUT_DIM)

    # Tiny batch: single 128-lane block.
    y = jax.block_until_ready(dnn_forward(x, params))
    y_ref = reference_forward(x, params)
    assert y.shape == (N, OUT_DIM)
    assert jnp.allclose(y, y_ref, atol=1e-5, rtol=1e-5), "mismatch vs JAX reference"

    # Larger batch: exercises the >=2-step "parallel" grid + padding path.
    N2 = 2500
    x2 = jax.random.normal(k_x, (N2, IN_DIM), jnp.float32)
    y2 = jax.block_until_ready(dnn_forward(x2, params))
    y2_ref = reference_forward(x2, params)
    assert y2.shape == (N2, OUT_DIM)
    assert jnp.allclose(y2, y2_ref, atol=1e-5, rtol=1e-5), "mismatch (tiled path)"

    print("KERNEL_OK")
</pallas_src>

<mosaic_0001>
module attributes {stable_mosaic.version = 11 : i64} {
  func.func @_mlp_kernel(%arg0: i32, %arg1: memref<2x128xf32, #tpu.memory_space<vmem>>, %arg2: memref<32x2xf32, #tpu.memory_space<vmem>>, %arg3: memref<32x1xf32, #tpu.memory_space<vmem>>, %arg4: memref<32x32xf32, #tpu.memory_space<vmem>>, %arg5: memref<32x1xf32, #tpu.memory_space<vmem>>, %arg6: memref<32x32xf32, #tpu.memory_space<vmem>>, %arg7: memref<32x1xf32, #tpu.memory_space<vmem>>, %arg8: memref<1x32xf32, #tpu.memory_space<vmem>>, %arg9: memref<1x1xf32, #tpu.memory_space<vmem>>, %arg10: memref<1x128xf32, #tpu.memory_space<vmem>>) attributes {dimension_semantics = [#tpu.dimension_semantics<parallel>], iteration_bounds = array<i64: 1>, scalar_prefetch = 0 : i64, scratch_operands = 0 : i64, tpu.core_type = #tpu.core_type<tc>, window_params = [{transform_indices = @transform_0, window_bounds = array<i64: 2, 128>}, {pipeline_mode = #tpu.pipeline_mode<synchronous>, transform_indices = @transform_1, window_bounds = array<i64: 32, 2>}, {pipeline_mode = #tpu.pipeline_mode<synchronous>, transform_indices = @transform_2, window_bounds = array<i64: 32, 1>}, {pipeline_mode = #tpu.pipeline_mode<synchronous>, transform_indices = @transform_3, window_bounds = array<i64: 32, 32>}, {pipeline_mode = #tpu.pipeline_mode<synchronous>, transform_indices = @transform_4, window_bounds = array<i64: 32, 1>}, {pipeline_mode = #tpu.pipeline_mode<synchronous>, transform_indices = @transform_5, window_bounds = array<i64: 32, 32>}, {pipeline_mode = #tpu.pipeline_mode<synchronous>, transform_indices = @transform_6, window_bounds = array<i64: 32, 1>}, {pipeline_mode = #tpu.pipeline_mode<synchronous>, transform_indices = @transform_7, window_bounds = array<i64: 1, 32>}, {pipeline_mode = #tpu.pipeline_mode<synchronous>, transform_indices = @transform_8, window_bounds = array<i64: 1, 1>}, {transform_indices = @transform_9, window_bounds = array<i64: 1, 128>}]} {
    %c0 = arith.constant 0 : index
    %c0_0 = arith.constant 0 : index
    %0 = vector.load %arg1[%c0, %c0_0] : memref<2x128xf32, #tpu.memory_space<vmem>>, vector<2x128xf32>
    %c0_1 = arith.constant 0 : index
    %c0_2 = arith.constant 0 : index
    %1 = vector.load %arg2[%c0_1, %c0_2] : memref<32x2xf32, #tpu.memory_space<vmem>>, vector<32x2xf32>
    %cst = arith.constant dense<0.000000e+00> : vector<32x128xf32>
    %2 = tpu.matmul %1, %0, %cst {dimension_numbers = #tpu.dot_dimension_numbers<[1], [0], [0], [1], [0, 0, 1, 1], [], []>, precision = #tpu.contract_precision<fp32>} : vector<32x2xf32>, vector<2x128xf32>, vector<32x128xf32> -> vector<32x128xf32>
    %c0_3 = arith.constant 0 : index
    %c0_4 = arith.constant 0 : index
    %3 = vector.load %arg3[%c0_3, %c0_4] : memref<32x1xf32, #tpu.memory_space<vmem>>, vector<32x1xf32>
    %4 = vector.broadcast %3 : vector<32x1xf32> to vector<32x128xf32>
    %5 = arith.addf %2, %4 : vector<32x128xf32>
    %6 = math.tanh %5 : vector<32x128xf32>
    %c0_5 = arith.constant 0 : index
    %c0_6 = arith.constant 0 : index
    %7 = vector.load %arg4[%c0_5, %c0_6] : memref<32x32xf32, #tpu.memory_space<vmem>>, vector<32x32xf32>
    %c0_7 = arith.constant 0 : index
    %c0_8 = arith.constant 0 : index
    %8 = vector.load %arg6[%c0_7, %c0_8] : memref<32x32xf32, #tpu.memory_space<vmem>>, vector<32x32xf32>
    %cst_9 = arith.constant dense<0.000000e+00> : vector<32x128xf32>
    %9 = tpu.matmul %7, %6, %cst_9 {dimension_numbers = #tpu.dot_dimension_numbers<[1], [0], [0], [1], [0, 0, 1, 1], [], []>, precision = #tpu.contract_precision<fp32>} : vector<32x32xf32>, vector<32x128xf32>, vector<32x128xf32> -> vector<32x128xf32>
    %c0_10 = arith.constant 0 : index
    %c0_11 = arith.constant 0 : index
    %10 = vector.load %arg5[%c0_10, %c0_11] : memref<32x1xf32, #tpu.memory_space<vmem>>, vector<32x1xf32>
    %11 = vector.broadcast %10 : vector<32x1xf32> to vector<32x128xf32>
    %12 = arith.addf %9, %11 : vector<32x128xf32>
    %13 = math.tanh %12 : vector<32x128xf32>
    %cst_12 = arith.constant dense<0.000000e+00> : vector<32x128xf32>
    %14 = tpu.matmul %8, %13, %cst_12 {dimension_numbers = #tpu.dot_dimension_numbers<[1], [0], [0], [1], [0, 0, 1, 1], [], []>, precision = #tpu.contract_precision<fp32>} : vector<32x32xf32>, vector<32x128xf32>, vector<32x128xf32> -> vector<32x128xf32>
    %c0_13 = arith.constant 0 : index
    %c0_14 = arith.constant 0 : index
    %15 = vector.load %arg7[%c0_13, %c0_14] : memref<32x1xf32, #tpu.memory_space<vmem>>, vector<32x1xf32>
    %16 = vector.broadcast %15 : vector<32x1xf32> to vector<32x128xf32>
    %17 = arith.addf %14, %16 : vector<32x128xf32>
    %18 = math.tanh %17 : vector<32x128xf32>
    %c0_15 = arith.constant 0 : index
    %c0_16 = arith.constant 0 : index
    %19 = vector.load %arg8[%c0_15, %c0_16] : memref<1x32xf32, #tpu.memory_space<vmem>>, vector<1x32xf32>
    %cst_17 = arith.constant dense<0.000000e+00> : vector<1x128xf32>
    %20 = tpu.matmul %19, %18, %cst_17 {dimension_numbers = #tpu.dot_dimension_numbers<[1], [0], [0], [1], [0, 0, 1, 1], [], []>, precision = #tpu.contract_precision<fp32>} : vector<1x32xf32>, vector<32x128xf32>, vector<1x128xf32> -> vector<1x128xf32>
    %c0_18 = arith.constant 0 : index
    %c0_19 = arith.constant 0 : index
    %21 = vector.load %arg9[%c0_18, %c0_19] : memref<1x1xf32, #tpu.memory_space<vmem>>, vector<1x1xf32>
    %22 = vector.broadcast %21 : vector<1x1xf32> to vector<1x128xf32>
    %23 = arith.addf %20, %22 : vector<1x128xf32>
    %c0_20 = arith.constant 0 : index
    %c0_21 = arith.constant 0 : index
    %24 = vector.load %arg10[%c0_20, %c0_21] : memref<1x128xf32, #tpu.memory_space<vmem>>, vector<1x128xf32>
    tpu.vector_store %arg10[%c0_20, %c0_21], %23 {strides = array<i32>} : memref<1x128xf32, #tpu.memory_space<vmem>>, vector<1x128xf32>,
    return
  }
  func.func @transform_0(%arg0: i32) -> (i32, i32) {
    %c0_i32 = arith.constant 0 : i32
    %c0_i32_0 = arith.constant 0 : i32
    return %c0_i32, %arg0 : i32, i32
  }
  func.func @transform_1(%arg0: i32) -> (i32, i32) {
    %c0_i32 = arith.constant 0 : i32
    %c0_i32_0 = arith.constant 0 : i32
    %c0_i32_1 = arith.constant 0 : i32
    return %c0_i32, %c0_i32_0 : i32, i32
  }
  func.func @transform_2(%arg0: i32) -> (i32, i32) {
    %c0_i32 = arith.constant 0 : i32
    %c0_i32_0 = arith.constant 0 : i32
    %c0_i32_1 = arith.constant 0 : i32
    return %c0_i32, %c0_i32_0 : i32, i32
  }
  func.func @transform_3(%arg0: i32) -> (i32, i32) {
    %c0_i32 = arith.constant 0 : i32
    %c0_i32_0 = arith.constant 0 : i32
    %c0_i32_1 = arith.constant 0 : i32
    return %c0_i32, %c0_i32_0 : i32, i32
  }
  func.func @transform_4(%arg0: i32) -> (i32, i32) {
    %c0_i32 = arith.constant 0 : i32
    %c0_i32_0 = arith.constant 0 : i32
    %c0_i32_1 = arith.constant 0 : i32
    return %c0_i32, %c0_i32_0 : i32, i32
  }
  func.func @transform_5(%arg0: i32) -> (i32, i32) {
    %c0_i32 = arith.constant 0 : i32
    %c0_i32_0 = arith.constant 0 : i32
    %c0_i32_1 = arith.constant 0 : i32
    return %c0_i32, %c0_i32_0 : i32, i32
  }
  func.func @transform_6(%arg0: i32) -> (i32, i32) {
    %c0_i32 = arith.constant 0 : i32
    %c0_i32_0 = arith.constant 0 : i32
    %c0_i32_1 = arith.constant 0 : i32
    return %c0_i32, %c0_i32_0 : i32, i32
  }
  func.func @transform_7(%arg0: i32) -> (i32, i32) {
    %c0_i32 = arith.constant 0 : i32
    %c0_i32_0 = arith.constant 0 : i32
    %c0_i32_1 = arith.constant 0 : i32
    return %c0_i32, %c0_i32_0 : i32, i32
  }
  func.func @transform_8(%arg0: i32) -> (i32, i32) {
    %c0_i32 = arith.constant 0 : i32
    %c0_i32_0 = arith.constant 0 : i32
    %c0_i32_1 = arith.constant 0 : i32
    return %c0_i32, %c0_i32_0 : i32, i32
  }
  func.func @transform_9(%arg0: i32) -> (i32, i32) {
    %c0_i32 = arith.constant 0 : i32
    %c0_i32_0 = arith.constant 0 : i32
    return %c0_i32, %arg0 : i32, i32
  }
}

</mosaic_0001>

<bundles_post_ra>
// kernel: tpu_custom_call.1
= control target key start
LH: loop header
LB: loop body
LE: loop exit
PB: predicated region body
PF: predicated region fallthrough
CT: control target
= control target key end

     0   :  { %s3561_s0 = inlined_call_operand.vmem [shape: f32[2,128], index: 0, kind: input, shape index: {}]   ;;  %s3562_s1 = inlined_call_operand.vmem [shape: f32[32,2], index: 1, kind: input, shape index: {}]   ;;  %s3563_s2 = inlined_call_operand.vmem [shape: f32[32,1], index: 2, kind: input, shape index: {}]   ;;  %s3564_s3 = inlined_call_operand.vmem [shape: f32[32,32], index: 3, kind: input, shape index: {}]   ;;  %s3565_s4 = inlined_call_operand.vmem [shape: f32[32,1], index: 4, kind: input, shape index: {}]   ;;  %s3566_s5 = inlined_call_operand.vmem [shape: f32[32,32], index: 5, kind: input, shape index: {}]   ;;  %s3567_s6 = inlined_call_operand.vmem [shape: f32[32,1], index: 6, kind: input, shape index: {}]   ;;  %s3568_s7 = inlined_call_operand.vmem [shape: f32[1,32], index: 7, kind: input, shape index: {}]   ;;  %s3569_s8 = inlined_call_operand.<no memory space> [shape: f32[1,1], index: 8, kind: input, shape index: {}]   ;;  %s3570_s9 = inlined_call_operand.hbm [shape: f32[1,128], index: 9, kind: output, shape index: {}]  }
   0x1   :  { %v14_v0 = vstv %s3569_s8 }
   0x2   :  { %15 = vst [vmem:[#allocation2] sm:$0x1] %v14_v0 }
   0x3   :  { %v35_v1 = vld [vmem:[%s3561_s0] sm:$0x3]  ;;  %vm77_vm0 = vcmask 1041408   ;;  %vm64_vm1 = vcmask 15360   ;;  %v37_v3 = vld [vmem:[%s3562_s1 + $0x8] sm:$0xff]  ;;  %v38_v7 = vld [vmem:[%s3562_s1 + $0x10] sm:$0xff] }
   0x4   :  { %v36_v2 = vld [vmem:[%s3562_s1] sm:$0xff]  ;;  %v79_v4 = vsel %vm77_vm0, %v35_v1, 0  ;;  %v69_v6 = vsel %vm64_vm1, %v37_v3, 0  ;;  %v39_v8 = vld [vmem:[%s3562_s1 + $0x18] sm:$0xff]  ;;  %v72_v12 = vsel %vm64_vm1, %v38_v7, 0  ;;  %v3199_v13 = vmov 0  }
   0x5   :  { %v66_v5 = vsel %vm64_vm1, %v36_v2, 0  ;;  %v3274_v9 = vand.u32 4294901760, %v79_v4  ;;  %v3278_v11 = vand.u32 4294901760, %v69_v6  ;;  %3149 = vset.pattern.permute.xlu0 %v3199_v13  ;;  %v40_v14 = vld [vmem:[%s3563_s2] sm:$0xff]  ;;  %3150 = vset.pattern.permute.xlu1 %v3199_v13  ;;  %v3284_v15 = vand.u32 4294901760, %v72_v12  ;;  %v42_v17 = vld [vmem:[%s3563_s2 + $0x10] sm:$0xff] }
   0x6   :  { %v3276_v10 = vand.u32 4294901760, %v66_v5  ;;  %v75_v16 = vsel %vm64_vm1, %v39_v8, 0  ;;  %46 = vperm.xlu0 %3149, %v40_v14   ;;  %v41_v22 = vld [vmem:[%s3563_s2 + $0x8] sm:$0xff]  ;;  %56 = vperm.xlu1 %3150, %v42_v17   ;;  %v43_v24 = vld [vmem:[%s3563_s2 + $0x18] sm:$0xff] }
   0x7   :  { %2647 = vmatprep.subr.mxu0 %v3274_v9  ;;  %v3295_v19 = vsub.f32 %v69_v6, %v3278_v11  ;;  %v189_v20 = vsub.f32 %v79_v4, %v3274_v9  ;;  %v3298_v21 = vand.u32 4294901760, %v75_v16  ;;  %v168_v23 = vsub.f32 %v72_v12, %v3284_v15 }
   0x8   :  { %v3292_v18 = vsub.f32 %v66_v5, %v3276_v10  ;;  %2648 = vmatpush3.msra.mxu0 %v3274_v9 }
   0x9   :  { %v159_v26 = vand.u32 4294901760, %v3295_v19  ;;  %v190_v27 = vand.u32 4294901760, %v189_v20  ;;  %v178_v28 = vsub.f32 %v75_v16, %v3298_v21  ;;  %v169_v29 = vand.u32 4294901760, %v168_v23 }
   0xa   :  { %v149_v25 = vand.u32 4294901760, %v3292_v18  ;;  %51 = vperm.xlu0 %3149, %v41_v22  }
   0xb   :  { %16 = vsyncpa [#allocation4], 0  ;;  %v160_v31 = vsub.f32 %v3295_v19, %v159_v26  ;;  %v191_v32 = vsub.f32 %v189_v20, %v190_v27  ;;  %v179_v33 = vand.u32 4294901760, %v178_v28  ;;  %v668_v34 = vld [vmem:[%s3565_s4] sm:$0xff]  ;;  %61 = vperm.xlu1 %3150, %v43_v24   ;;  %v170_v35 = vsub.f32 %v168_v23, %v169_v29  ;;  %v669_v40 = vld [vmem:[%s3565_s4 + $0x8] sm:$0xff] }
   0xc   :  { %v150_v30 = vsub.f32 %v3292_v18, %v149_v25  ;;  %v670_v42 = vld [vmem:[%s3565_s4 + $0x10] sm:$0xff]  ;;  %v671_v44 = vld [vmem:[%s3565_s4 + $0x18] sm:$0xff]  ;;  %v1323_v45 = vld [vmem:[%s3567_s6] sm:$0xff]  ;;  %vm692_vm2 = vcmask 261120   ;;  %vm3201_vm3 = vmmov 0  }
   0xd   :  { %v161_v37 = vand.u32 4294901760, %v160_v31  ;;  %v192_v38 = vand.u32 4294901760, %v191_v32  ;;  %v180_v39 = vsub.f32 %v178_v28, %v179_v33  ;;  %v171_v41 = vand.u32 4294901760, %v170_v35  ;;  %v1324_v46 = vld [vmem:[%s3567_s6 + $0x8] sm:$0xff]  ;;  %v1325_v47 = vld [vmem:[%s3567_s6 + $0x10] sm:$0xff]  ;;  %v1326_v48 = vld [vmem:[%s3567_s6 + $0x18] sm:$0xff] }
   0xe   :  { %v151_v36 = vand.u32 4294901760, %v150_v30  ;;  %674 = vperm.xlu0 %3149, %v668_v34   ;;  %v1978_v49 = vld [vmem:[#allocation2] sm:$0x1]  ;;  %v661_v61 = vld [vmem:[%s3564_s3 + $0x8] sm:$0xff]  ;;  %v662_v1 = vld [vmem:[%s3564_s3 + $0x10] sm:$0xff] }
   0xf   :  { %2655 = vmatprep.subr.mxu0 %v192_v38  ;;  %v181_v43 = vand.u32 4294901760, %v180_v39  ;;  %679 = vperm.xlu1 %3150, %v669_v40   ;;  %v660_v50 = vld [vmem:[%s3564_s3] sm:$0xff]  ;;  %v697_v2 = vsel %vm692_vm2, %v661_v61, 0  ;;  %v700_v7 = vsel %vm692_vm2, %v662_v1, 0  ;;  %v663_v8 = vld [vmem:[%s3564_s3 + $0x18] sm:$0xff] }
  0x10   :  { %2649 = vmatprep.mubr.f32.mxu0 %v151_v36  ;;  %v694_v51 = vsel %vm692_vm2, %v660_v50, 0  ;;  %v703_v12 = vsel %vm692_vm2, %v663_v8, 0  ;;  %v666_v8 = vld [vmem:[%s3566_s5 + $0x10] sm:$0xff] }
  0x11   :  { %2650 = vmatmul.mubr.f32.vlgmr.msra.gmra.mrb[0].mxu0 %v161_v37  ;;  %v3359_v52 = vand.u32 4294901760, %v694_v51  ;;  %v3387_v14 = vand.u32 4294901760, %v703_v12 }
  0x12   :  { %2656 = vmatpush3.msra.mxu0 %v192_v38  ;;  %2652 = vmatprep.mubr.f32.mxu0 %v171_v41 }
  0x13   :  { %2663 = vmatprep.subr.mxu0 %v189_v20  ;;  %684 = vperm.xlu0 %3149, %v670_v42   ;;  %v3362_v53 = vsub.f32 %v694_v51, %v3359_v52 }
  0x14   :  { %689 = vperm.xlu1 %3150, %v671_v44  }
  0x15   :  { %2653 = vmatmul.mubr.f32.gmra.mrb[2].mxu0 %v181_v43  ;;  %v776_v54 = vand.u32 4294901760, %v3362_v53 }
  0x16   :  { %2657 = vmatprep.mubr.f32.mxu0 %v3276_v10 }
  0x17   :  { %1329 = vperm.xlu0 %3149, %v1323_v45   ;;  %v777_v55 = vsub.f32 %v3362_v53, %v776_v54 }
  0x18   :  { %1334 = vperm.xlu1 %3150, %v1324_v46  }
  0x19   :  { %2658 = vmatmul.mubr.f32.vlgmr.msra.gmra.mrb[0].mxu0 %v3278_v11  ;;  %v778_v56 = vand.u32 4294901760, %v777_v55 }
  0x1a   :  { %2664 = vmatpush3.msra.mxu0 %v189_v20  ;;  %2660 = vmatprep.mubr.f32.mxu0 %v3284_v15 }
  0x1b   :  { %2671 = vmatprep.subr.mxu0 %v3274_v9  ;;  %1339 = vperm.xlu0 %3149, %v1325_v47  }
  0x1c   :  { %1344 = vperm.xlu1 %3150, %v1326_v48   ;;  %2703 = vmatprep.mubr.f32.mxu1 %v778_v56 }
  0x1d   :  { %2661 = vmatmul.mubr.f32.gmra.mrb[2].mxu0 %v3298_v21 }
  0x1e   :  { %2665 = vmatprep.mubr.f32.mxu0 %v3292_v18 }
  0x1f   :  { %1981 = vperm.xlu0 %3149, %v1978_v49  }
  0x21   :  { %2666 = vmatmul.mubr.f32.vlgmr.msra.gmra.mrb[0].mxu0 %v3295_v19 }
  0x22   :  { %2672 = vmatpush3.msra.mxu0 %v3274_v9  ;;  %2668 = vmatprep.mubr.f32.mxu0 %v168_v23 }
  0x23   :  { %2679 = vmatprep.subr.mxu0 %v190_v27 }
  0x25   :  { %2669 = vmatmul.mubr.f32.gmra.mrb[2].mxu0 %v178_v28 }
  0x26   :  { %2673 = vmatprep.mubr.f32.mxu0 %v149_v25 }
  0x29   :  { %2674 = vmatmul.mubr.f32.vlgmr.msra.gmra.mrb[0].mxu0 %v159_v26 }
  0x2a   :  { %2680 = vmatpush3.msra.mxu0 %v190_v27  ;;  %2676 = vmatprep.mubr.f32.mxu0 %v169_v29 }
  0x2b   :  { %2687 = vmatprep.subr.mxu0 %v3274_v9 }
  0x2d   :  { %2677 = vmatmul.mubr.f32.gmra.mrb[2].mxu0 %v179_v33 }
  0x2e   :  { %2681 = vmatprep.mubr.f32.mxu0 %v3276_v10 }
  0x31   :  { %2682 = vmatmul.mubr.f32.vlgmr.msra.gmra.mrb[0].mxu0 %v3278_v11 }
  0x32   :  { %2688 = vmatpush3.msra.mxu0 %v3274_v9  ;;  %2684 = vmatprep.mubr.f32.mxu0 %v3284_v15 }
  0x35   :  { %2685 = vmatmul.mubr.f32.gmra.mrb[2].mxu0 %v3298_v21 }
  0x36   :  { %2689 = vmatprep.mubr.f32.mxu0 %v3276_v10  ;;  %v3379_v10 = vand.u32 4294901760, %v697_v2 }
  0x38   :  { %v3385_v13 = vsub.f32 %v697_v2, %v3379_v10 }
  0x39   :  { %2690 = vmatmul.mubr.f32.vlgmr.msra.gmra.mrb[0].mxu0 %v3278_v11  ;;  %v3381_v11 = vand.u32 4294901760, %v700_v7 }
  0x3a   :  { %2692 = vmatprep.mubr.f32.mxu0 %v3284_v15  ;;  %v786_v19 = vand.u32 4294901760, %v3385_v13 }
  0x3b   :  { %v3390_v15 = vsub.f32 %v700_v7, %v3381_v11 }
  0x3c   :  { %v787_v29 = vsub.f32 %v3385_v13, %v786_v19 }
  0x3d   :  { %2693 = vmatmul.mubr.f32.gmra.mrb[2].mxu0 %v3298_v21  ;;  %v3394_v21 = vsub.f32 %v703_v12, %v3387_v14  ;;  %v796_v23 = vand.u32 4294901760, %v3390_v15 }
  0x3e   :  { %v788_v42 = vand.u32 4294901760, %v787_v29 }
  0x3f   :  { %v806_v33 = vand.u32 4294901760, %v3394_v21  ;;  %v797_v36 = vsub.f32 %v3390_v15, %v796_v23 }
  0x41   :  { %v807_v46 = vsub.f32 %v3394_v21, %v806_v33  ;;  %v798_v49 = vand.u32 4294901760, %v797_v36 }
  0x85   :  { %v47_v57 = vpop.permute.xlu0 %46  ;;  %v57_v58 = vpop.permute.xlu1 %56 }
  0x89   :  { %v52_v59 = vpop.permute.xlu0 %51 }
  0x8a   :  { %v62_v3 = vpop.permute.xlu1 %61 }
  0x8d   :  { %v675_v2 = vpop.permute.xlu0 %674 }
  0x8e   :  { %v680_v1 = vpop.permute.xlu1 %679 }
  0x92   :  { %v685_v12 = vpop.permute.xlu0 %684 }
 0x10c   :  { %v2691_v60 = vpop.f32.mrb[0].mxu0 }
 0x10d   :  { %v3061_v62 = vadd.f32 %v2691_v60, %v52_v59  ;;  %v634_v63 = vpop.f32.mrb[1].mxu0 }
 0x10e   :  { %v3062_v0 = vadd.f32 %v634_v63, %v47_v57 }
 0x10f   :  { %3151 = vtanh.f32 %v3061_v62 }
 0x110   :  { %3153 = vtanh.f32 %v3062_v0  ;;  %v2694_v4 = vpop.f32.mrb[2].mxu0 }
 0x111   :  { %v3063_v5 = vadd.f32 %v2694_v4, %v62_v3  ;;  %v646_v6 = vpop.f32.mrb[3].mxu0  ;;  %v665_v4 = vld [vmem:[%s3566_s5 + $0x8] sm:$0xff] }
 0x112   :  { %v3064_v9 = vadd.f32 %v646_v6, %v57_v58  ;;  %v808_v58 = vand.u32 4294901760, %v807_v46 }
 0x113   :  { %3155 = vtanh.f32 %v3063_v5 }
 0x114   :  { %3157 = vtanh.f32 %v3064_v9  ;;  %v1351_v9 = vsel %vm692_vm2, %v665_v4, 0 }
 0x119   :  { %v3152_v16 = vpop.eup %3151 }
 0x11a   :  { %v3154_v17 = vpop.eup %3153  ;;  %v709_v18 = vand.u32 4294901760, %v3152_v16 }
 0x11b   :  { %v706_v20 = vand.u32 4294901760, %v3154_v17 }
 0x11c   :  { %v823_v22 = vsub.f32 %v3152_v16, %v709_v18  ;;  %v667_v16 = vld [vmem:[%s3566_s5 + $0x18] sm:$0xff] }
 0x11d   :  { %v3156_v24 = vpop.eup %3155  ;;  %v3397_v25 = vpack.c.bf16 %v709_v18, %v706_v20  ;;  %v816_v26 = vsub.f32 %v3154_v17, %v706_v20  ;;  %v3459_v18 = vand.u32 4294901760, %v1351_v9  ;;  %v1357_v20 = vsel %vm692_vm2, %v667_v16, 0 }
 0x11e   :  { %v3158_v27 = vpop.eup %3157  ;;  %v715_v28 = vand.u32 4294901760, %v3156_v24  ;;  %v824_v30 = vand.u32 4294901760, %v823_v22 }
 0x11f   :  { %v712_v31 = vand.u32 4294901760, %v3158_v27  ;;  %2930 = vmatprep.subr.bf16.mxu1 %v3397_v25  ;;  %v817_v32 = vand.u32 4294901760, %v816_v26  ;;  %v2945_v34 = vpack.c.bf16 %v823_v22, %v816_v26 }
 0x120   :  { %2932 = vmatpush3.bf16.msra.mxu1 %v3397_v25  ;;  %v825_v35 = vsub.f32 %v823_v22, %v824_v30  ;;  %v837_v37 = vsub.f32 %v3156_v24, %v715_v28  ;;  %v3467_v22 = vand.u32 4294901760, %v1357_v20 }
 0x121   :  { %v2933_v38 = vpack.c.bf16 %v715_v28, %v712_v31  ;;  %v818_v39 = vsub.f32 %v816_v26, %v817_v32  ;;  %v830_v40 = vsub.f32 %v3158_v27, %v712_v31  ;;  %v2961_v41 = vpack.c.bf16 %v824_v30, %v817_v32 }
 0x122   :  { %v826_v43 = vand.u32 4294901760, %v825_v35  ;;  %v838_v44 = vand.u32 4294901760, %v837_v37  ;;  %v3474_v29 = vsub.f32 %v1357_v20, %v3467_v22 }
 0x123   :  { %2934 = vmatprep.subr.bf16.mxu1 %v2933_v38  ;;  %v819_v45 = vand.u32 4294901760, %v818_v39  ;;  %v831_v47 = vand.u32 4294901760, %v830_v40  ;;  %v2949_v48 = vpack.c.bf16 %v837_v37, %v830_v40 }
 0x124   :  { %2936 = vmatpush3.bf16.msra.mxu1 %v2933_v38  ;;  %v839_v50 = vsub.f32 %v837_v37, %v838_v44 }
 0x125   :  { %v2937_v51 = vpack.c.bf16 %v826_v43, %v819_v45  ;;  %v832_v55 = vsub.f32 %v830_v40, %v831_v47  ;;  %v2965_v56 = vpack.c.bf16 %v838_v44, %v831_v47 }
 0x126   :  { %v840_v57 = vand.u32 4294901760, %v839_v50 }
 0x127   :  { %2704 = vmatmul.mubr.f32.vlgmr.msra.gmra.mrb[0].mxu1 %v788_v42  ;;  %2938 = vmatprep.subr.bf16.mxu1 %v2937_v51  ;;  %v833_v59 = vand.u32 4294901760, %v832_v55 }
 0x128   :  { %2940 = vmatpush3.bf16.msra.mxu1 %v2937_v51  ;;  %2706 = vmatprep.mubr.f32.mxu1 %v798_v49 }
 0x129   :  { %v2941_v60 = vpack.c.bf16 %v840_v57, %v833_v59 }
 0x12b   :  { %2707 = vmatmul.mubr.f32.gmra.mrb[2].mxu1 %v808_v58  ;;  %2942 = vmatprep.subr.bf16.mxu1 %v2941_v60 }
 0x12c   :  { %2944 = vmatpush3.bf16.msra.mxu1 %v2941_v60  ;;  %2717 = vmatprep.mubr.f32.mxu1 %v3359_v52 }
 0x12d   :  { %2946 = vmatprep.subr.bf16.mxu1 %v2945_v34 }
 0x12f   :  { %2718 = vmatmul.mubr.f32.vlgmr.msra.gmra.mrb[0].mxu1 %v3379_v10 }
 0x130   :  { %2948 = vmatpush3.bf16.msra.mxu1 %v2945_v34  ;;  %2720 = vmatprep.mubr.f32.mxu1 %v3381_v11 }
 0x131   :  { %2950 = vmatprep.subr.bf16.mxu1 %v2949_v48 }
 0x133   :  { %2721 = vmatmul.mubr.f32.gmra.mrb[2].mxu1 %v3387_v14 }
 0x134   :  { %2952 = vmatpush3.bf16.msra.mxu1 %v2949_v48  ;;  %2731 = vmatprep.mubr.f32.mxu1 %v3362_v53  ;;  %v664_v53 = vld [vmem:[%s3566_s5] sm:$0xff] }
 0x135   :  { %2954 = vmatprep.subr.bf16.mxu1 %v3397_v25 }
 0x137   :  { %2732 = vmatmul.mubr.f32.vlgmr.msra.gmra.mrb[0].mxu1 %v3385_v13 }
 0x138   :  { %2956 = vmatpush3.bf16.msra.mxu1 %v3397_v25  ;;  %2734 = vmatprep.mubr.f32.mxu1 %v3390_v15  ;;  %v1354_v15 = vsel %vm692_vm2, %v666_v8, 0 }
 0x139   :  { %2958 = vmatprep.subr.bf16.mxu1 %v2933_v38 }
 0x13b   :  { %2735 = vmatmul.mubr.f32.gmra.mrb[2].mxu1 %v3394_v21  ;;  %v3465_v21 = vsub.f32 %v1351_v9, %v3459_v18 }
 0x13c   :  { %2960 = vmatpush3.bf16.msra.mxu1 %v2933_v38  ;;  %2745 = vmatprep.mubr.f32.mxu1 %v776_v54  ;;  %v1348_v54 = vsel %vm692_vm2, %v664_v53, 0 }
 0x13d   :  { %2962 = vmatprep.subr.bf16.mxu1 %v2961_v41  ;;  %v3439_v61 = vand.u32 4294901760, %v1348_v54  ;;  %v1440_v27 = vand.u32 4294901760, %v3465_v21 }
 0x13f   :  { %2746 = vmatmul.mubr.f32.vlgmr.msra.gmra.mrb[0].mxu1 %v786_v19  ;;  %v3442_v62 = vsub.f32 %v1348_v54, %v3439_v61  ;;  %v3461_v19 = vand.u32 4294901760, %v1354_v15  ;;  %v1441_v37 = vsub.f32 %v3465_v21, %v1440_v27 }
 0x140   :  { %2964 = vmatpush3.bf16.msra.mxu1 %v2961_v41  ;;  %2748 = vmatprep.mubr.f32.mxu1 %v796_v23  ;;  %v1460_v41 = vand.u32 4294901760, %v3474_v29 }
 0x141   :  { %2966 = vmatprep.subr.bf16.mxu1 %v2965_v56  ;;  %v1430_v63 = vand.u32 4294901760, %v3442_v62  ;;  %v3470_v23 = vsub.f32 %v1354_v15, %v3461_v19  ;;  %v1442_v50 = vand.u32 4294901760, %v1441_v37 }
 0x142   :  { %v1461_v57 = vsub.f32 %v3474_v29, %v1460_v41 }
 0x143   :  { %2749 = vmatmul.mubr.f32.gmra.mrb[2].mxu1 %v806_v33  ;;  %v1450_v31 = vand.u32 4294901760, %v3470_v23 }
 0x144   :  { %2968 = vmatpush3.bf16.msra.mxu1 %v2965_v56  ;;  %2759 = vmatprep.mubr.f32.mxu1 %v3359_v52 }
 0x145   :  { %2970 = vmatprep.subr.bf16.mxu1 %v3397_v25  ;;  %v1451_v44 = vsub.f32 %v3470_v23, %v1450_v31 }
 0x147   :  { %2760 = vmatmul.mubr.f32.vlgmr.msra.gmra.mrb[0].mxu1 %v3379_v10  ;;  %v1452_v60 = vand.u32 4294901760, %v1451_v44 }
 0x148   :  { %2972 = vmatpush3.bf16.msra.mxu1 %v3397_v25  ;;  %2762 = vmatprep.mubr.f32.mxu1 %v3381_v11 }
 0x149   :  { %2974 = vmatprep.subr.bf16.mxu1 %v2933_v38 }
 0x14b   :  { %2763 = vmatmul.mubr.f32.gmra.mrb[2].mxu1 %v3387_v14 }
 0x14c   :  { %2976 = vmatpush3.bf16.msra.mxu1 %v2933_v38  ;;  %2773 = vmatprep.mubr.f32.mxu1 %v3359_v52  ;;  %v1431_v52 = vsub.f32 %v3442_v62, %v1430_v63 }
 0x14e   :  { %v1432_v0 = vand.u32 4294901760, %v1431_v52 }
 0x14f   :  { %2774 = vmatmul.mubr.f32.vlgmr.msra.gmra.mrb[0].mxu1 %v3379_v10  ;;  %v690_v10 = vpop.permute.xlu1 %689 }
 0x150   :  { %2776 = vmatprep.mubr.f32.mxu1 %v3381_v11  ;;  %2787 = vmatprep.mubr.f32.mxu0 %v1432_v0 }
 0x153   :  { %2777 = vmatmul.mubr.f32.gmra.mrb[2].mxu1 %v3387_v14 }
 0x222   :  { %v2775_v3 = vpop.f32.mrb[0].mxu1 }
 0x223   :  { %v3065_v5 = vadd.f32 %v2775_v3, %v680_v1  ;;  %v1297_v6 = vpop.f32.mrb[1].mxu1 }
 0x224   :  { %v3066_v7 = vadd.f32 %v1297_v6, %v675_v2  ;;  %v1462_v2 = vand.u32 4294901760, %v1461_v57  ;;  %v1330_v6 = vpop.permute.xlu0 %1329 }
 0x225   :  { %3159 = vtanh.f32 %v3065_v5  ;;  %v1335_v5 = vpop.permute.xlu1 %1334 }
 0x226   :  { %3161 = vtanh.f32 %v3066_v7  ;;  %v2778_v11 = vpop.f32.mrb[2].mxu1 }
 0x227   :  { %v3067_v13 = vadd.f32 %v2778_v11, %v690_v10  ;;  %v1309_v14 = vpop.f32.mrb[3].mxu1 }
 0x228   :  { %v3068_v17 = vadd.f32 %v1309_v14, %v685_v12  ;;  %v1340_v14 = vpop.permute.xlu0 %1339 }
 0x229   :  { %3163 = vtanh.f32 %v3067_v13  ;;  %v1345_v12 = vpop.permute.xlu1 %1344 }
 0x22a   :  { %3165 = vtanh.f32 %v3068_v17 }
 0x22f   :  { %v3160_v24 = vpop.eup %3159 }
 0x230   :  { %v3162_v25 = vpop.eup %3161  ;;  %v1363_v26 = vand.u32 4294901760, %v3160_v24 }
 0x231   :  { %v1360_v28 = vand.u32 4294901760, %v3162_v25 }
 0x232   :  { %v1477_v30 = vsub.f32 %v3160_v24, %v1363_v26 }
 0x233   :  { %v3164_v32 = vpop.eup %3163  ;;  %v3477_v33 = vpack.c.bf16 %v1363_v26, %v1360_v28  ;;  %v1470_v34 = vsub.f32 %v3162_v25, %v1360_v28 }
 0x234   :  { %v3166_v35 = vpop.eup %3165  ;;  %v1369_v36 = vand.u32 4294901760, %v3164_v32  ;;  %v1478_v38 = vand.u32 4294901760, %v1477_v30 }
 0x235   :  { %v1366_v39 = vand.u32 4294901760, %v3166_v35  ;;  %2978 = vmatprep.subr.bf16.mxu0 %v3477_v33  ;;  %v1471_v40 = vand.u32 4294901760, %v1470_v34  ;;  %v2993_v42 = vpack.c.bf16 %v1477_v30, %v1470_v34 }
 0x236   :  { %2980 = vmatpush3.bf16.msra.mxu0 %v3477_v33  ;;  %v1479_v43 = vsub.f32 %v1477_v30, %v1478_v38  ;;  %v1491_v45 = vsub.f32 %v3164_v32, %v1369_v36 }
 0x237   :  { %v2981_v46 = vpack.c.bf16 %v1369_v36, %v1366_v39  ;;  %v1472_v47 = vsub.f32 %v1470_v34, %v1471_v40  ;;  %v1484_v48 = vsub.f32 %v3166_v35, %v1366_v39  ;;  %v3009_v49 = vpack.c.bf16 %v1478_v38, %v1471_v40 }
 0x238   :  { %v1480_v51 = vand.u32 4294901760, %v1479_v43  ;;  %v1492_v55 = vand.u32 4294901760, %v1491_v45 }
 0x239   :  { %2982 = vmatprep.subr.bf16.mxu0 %v2981_v46  ;;  %v1473_v56 = vand.u32 4294901760, %v1472_v47  ;;  %v1485_v58 = vand.u32 4294901760, %v1484_v48  ;;  %v2997_v59 = vpack.c.bf16 %v1491_v45, %v1484_v48 }
 0x23a   :  { %2984 = vmatpush3.bf16.msra.mxu0 %v2981_v46  ;;  %v1493_v53 = vsub.f32 %v1491_v45, %v1492_v55 }
 0x23b   :  { %v2985_v54 = vpack.c.bf16 %v1480_v51, %v1473_v56  ;;  %v1486_v52 = vsub.f32 %v1484_v48, %v1485_v58  ;;  %v3013_v0 = vpack.c.bf16 %v1492_v55, %v1485_v58  ;;  %v1984_v58 = vlaneseq }
 0x23c   :  { %v1494_v1 = vand.u32 4294901760, %v1493_v53  ;;  %v1982_v53 = vpop.permute.xlu0 %1981 }
 0x23d   :  { %2788 = vmatmul.mubr.f32.vlgmr.msra.gmra.mrb[4].mxu0 %v1442_v50  ;;  %2986 = vmatprep.subr.bf16.mxu0 %v2985_v54  ;;  %v1487_v3 = vand.u32 4294901760, %v1486_v52 }
 0x23e   :  { %2988 = vmatpush3.bf16.msra.mxu0 %v2985_v54  ;;  %2790 = vmatprep.mubr.f32.mxu0 %v1452_v60 }
 0x23f   :  { %v2989_v4 = vpack.c.bf16 %v1494_v1, %v1487_v3 }
 0x241   :  { %2791 = vmatmul.mubr.f32.gmra.mrb[6].mxu0 %v1462_v2  ;;  %2990 = vmatprep.subr.bf16.mxu0 %v2989_v4 }
 0x242   :  { %2992 = vmatpush3.bf16.msra.mxu0 %v2989_v4  ;;  %2801 = vmatprep.mubr.f32.mxu0 %v3439_v61 }
 0x243   :  { %2994 = vmatprep.subr.bf16.mxu0 %v2993_v42 }
 0x245   :  { %2802 = vmatmul.mubr.f32.vlgmr.msra.gmra.mrb[4].mxu0 %v3459_v18 }
 0x246   :  { %2996 = vmatpush3.bf16.msra.mxu0 %v2993_v42  ;;  %2804 = vmatprep.mubr.f32.mxu0 %v3461_v19 }
 0x247   :  { %2998 = vmatprep.subr.bf16.mxu0 %v2997_v59 }
 0x249   :  { %2805 = vmatmul.mubr.f32.gmra.mrb[6].mxu0 %v3467_v22 }
 0x24a   :  { %3000 = vmatpush3.bf16.msra.mxu0 %v2997_v59  ;;  %2815 = vmatprep.mubr.f32.mxu0 %v3442_v62  ;;  %v3200_v62 = vmov 0.0|0.0   ;;  %v1985_v59 = vshrl.u32 %v1984_v58, 7 }
 0x24b   :  { %3002 = vmatprep.subr.bf16.mxu0 %v3477_v33  ;;  %3025 = vmatprep.subr.bf16.mxu1 %v3200_v62 }
 0x24c   :  { %v1986_v60 = vsub.s32 0, %v1985_v59 }
 0x24d   :  { %2816 = vmatmul.mubr.f32.vlgmr.msra.gmra.mrb[4].mxu0 %v3465_v21 }
 0x24e   :  { %3004 = vmatpush3.bf16.msra.mxu0 %v3477_v33  ;;  %2818 = vmatprep.mubr.f32.mxu0 %v3470_v23  ;;  %v1987_v54 = vrot.slane %v1982_v53, %v1986_v60 }
 0x24f   :  { %3006 = vmatprep.subr.bf16.mxu0 %v2981_v46 }
 0x251   :  { %2819 = vmatmul.mubr.f32.gmra.mrb[6].mxu0 %v3474_v29 }
 0x252   :  { %3008 = vmatpush3.bf16.msra.mxu0 %v2981_v46  ;;  %2829 = vmatprep.mubr.f32.mxu0 %v1430_v63  ;;  %v3202_v63 = vmov 0.0  }
 0x253   :  { %3010 = vmatprep.subr.bf16.mxu0 %v3009_v49  ;;  %2871 = vmatprep.mubr.msk.f32.mxu1 %vm3201_vm3, %v3202_v63 }
 0x255   :  { %2830 = vmatmul.mubr.f32.vlgmr.msra.gmra.mrb[4].mxu0 %v1440_v27 }
 0x256   :  { %3012 = vmatpush3.bf16.msra.mxu0 %v3009_v49  ;;  %2832 = vmatprep.mubr.f32.mxu0 %v1450_v31 }
 0x257   :  { %3014 = vmatprep.subr.bf16.mxu0 %v3013_v0 }
 0x259   :  { %2833 = vmatmul.mubr.f32.gmra.mrb[6].mxu0 %v1460_v41 }
 0x25a   :  { %3016 = vmatpush3.bf16.msra.mxu0 %v3013_v0  ;;  %2843 = vmatprep.mubr.f32.mxu0 %v3439_v61 }
 0x25b   :  { %3018 = vmatprep.subr.bf16.mxu0 %v3477_v33 }
 0x25d   :  { %2844 = vmatmul.mubr.f32.vlgmr.msra.gmra.mrb[4].mxu0 %v3459_v18 }
 0x25e   :  { %3020 = vmatpush3.bf16.msra.mxu0 %v3477_v33  ;;  %2846 = vmatprep.mubr.f32.mxu0 %v3461_v19 }
 0x25f   :  { %3022 = vmatprep.subr.bf16.mxu0 %v2981_v46 }
 0x261   :  { %2847 = vmatmul.mubr.f32.gmra.mrb[6].mxu0 %v3467_v22 }
 0x262   :  { %3024 = vmatpush3.bf16.msra.mxu0 %v2981_v46  ;;  %2857 = vmatprep.mubr.f32.mxu0 %v3439_v61  ;;  %v1977_v61 = vld [vmem:[%s3568_s7] sm:$0x1]  ;;  %s3203_s7 = smov [#allocation3]  }
 0x263   :  { %v1989_v11 = vsel %vm692_vm2, %v1977_v61, 0  ;;  %s2483_s30 = sshll.u32 %s3203_s7, 4  ;;  %s2484_s30 = int_to_ptr.vmem [resolvable:$true] %s2483_s30 }
 0x264   :  { %s3175_s10 = scalar_lea.vmem %s2484_s30, 16  ;;  %s3179_s11 = scalar_lea.vmem %s2484_s30, 32 }
 0x265   :  { %2858 = vmatmul.mubr.f32.vlgmr.msra.gmra.mrb[4].mxu0 %v3459_v18  ;;  %v3522_v18 = vand.u32 4294901760, %v1989_v11  ;;  %p3176_p0 = scmp.ne.s32.totalorder %s2484_s30, %s3175_s10  ;;  %p3180_p1 = scmp.lt.s32.totalorder %s2484_s30, %s2484_s30 }
 0x266   :  { %2860 = vmatprep.mubr.f32.mxu0 %v3461_v19  ;;  %p3181_p2 = scmp.lt.s32.totalorder %s3179_s11, %s3175_s10 }
 0x267   :  { %v2061_v19 = vsub.f32 %v1989_v11, %v3522_v18 }
 0x268   :  { %p3182_p3 = por %p3181_p2, %p3180_p1 }
 0x269   :  { %2861 = vmatmul.mubr.f32.gmra.mrb[6].mxu0 %v3467_v22  ;;  %v2062_v23 = vand.u32 4294901760, %v2061_v19 }
 0x26a   :  { %p3183_p4 = pnand %p3182_p3, %p3176_p0 }
 0x26b   :  { %v2063_v31 = vsub.f32 %v2061_v19, %v2062_v23 }
 0x26d   :  { %v2064_v42 = vand.u32 4294901760, %v2063_v31 }
 0x338   :  { %v2859_v7 = vpop.f32.mrb[4].mxu0 }
 0x339   :  { %v3069_v8 = vadd.f32 %v2859_v7, %v1335_v5  ;;  %v1951_v9 = vpop.f32.mrb[5].mxu0 }
 0x33a   :  { %v3070_v10 = vadd.f32 %v1951_v9, %v1330_v6 }
 0x33b   :  { %3167 = vtanh.f32 %v3069_v8 }
 0x33c   :  { %3169 = vtanh.f32 %v3070_v10  ;;  %v2862_v13 = vpop.f32.mrb[6].mxu0 }
 0x33d   :  { %v3071_v15 = vadd.f32 %v2862_v13, %v1345_v12  ;;  %v1963_v16 = vpop.f32.mrb[7].mxu0 }
 0x33e   :  { %v3072_v17 = vadd.f32 %v1963_v16, %v1340_v14 }
 0x33f   :  { %3171 = vtanh.f32 %v3071_v15 }
 0x340   :  { %3173 = vtanh.f32 %v3072_v17 }
 0x345   :  { %v3168_v20 = vpop.eup %3167 }
 0x346   :  { %v3170_v21 = vpop.eup %3169  ;;  %v1995_v22 = vand.u32 4294901760, %v3168_v20 }
 0x347   :  { %v1992_v24 = vand.u32 4294901760, %v3170_v21 }
 0x348   :  { %v2079_v25 = vsub.f32 %v3168_v20, %v1995_v22 }
 0x349   :  { %v3172_v26 = vpop.eup %3171  ;;  %v3026_v27 = vpack.c.bf16 %v1995_v22, %v1992_v24  ;;  %v2072_v28 = vsub.f32 %v3170_v21, %v1992_v24 }
 0x34a   :  { %v3174_v29 = vpop.eup %3173  ;;  %v2001_v30 = vand.u32 4294901760, %v3172_v26  ;;  %v2080_v32 = vand.u32 4294901760, %v2079_v25 }
 0x34b   :  { %3027 = vmatpush3.bf16.msra.mxu1 %v3026_v27  ;;  %v1998_v33 = vand.u32 4294901760, %v3174_v29  ;;  %v2073_v34 = vand.u32 4294901760, %v2072_v28  ;;  %v3038_v35 = vpack.c.bf16 %v2079_v25, %v2072_v28 }
 0x34c   :  { %3028 = vmatprep.subr.bf16.mxu1 %v3200_v62  ;;  %v2093_v36 = vsub.f32 %v3172_v26, %v2001_v30  ;;  %v2081_v37 = vsub.f32 %v2079_v25, %v2080_v32 }
 0x34d   :  { %v3029_v38 = vpack.c.bf16 %v2001_v30, %v1998_v33  ;;  %v2086_v39 = vsub.f32 %v3174_v29, %v1998_v33  ;;  %v2074_v40 = vsub.f32 %v2072_v28, %v2073_v34  ;;  %v3050_v41 = vpack.c.bf16 %v2080_v32, %v2073_v34 }
 0x34e   :  { %v2082_v43 = vand.u32 4294901760, %v2081_v37  ;;  %v2094_v44 = vand.u32 4294901760, %v2093_v36 }
 0x34f   :  { %3030 = vmatpush3.bf16.msra.mxu1 %v3029_v38  ;;  %v2075_v45 = vand.u32 4294901760, %v2074_v40  ;;  %v2087_v46 = vand.u32 4294901760, %v2086_v39  ;;  %v3041_v47 = vpack.c.bf16 %v2093_v36, %v2086_v39 }
 0x350   :  { %3031 = vmatprep.subr.bf16.mxu1 %v3200_v62  ;;  %v2095_v48 = vsub.f32 %v2093_v36, %v2094_v44 }
 0x351   :  { %v3032_v49 = vpack.c.bf16 %v2082_v43, %v2075_v45  ;;  %v2088_v50 = vsub.f32 %v2086_v39, %v2087_v46  ;;  %v3053_v51 = vpack.c.bf16 %v2094_v44, %v2087_v46 }
 0x352   :  { %2872 = vmatmul.mubr.f32.vlgmr.msra.gmra.mrb[4].mxu1 %v2064_v42  ;;  %v2096_v55 = vand.u32 4294901760, %v2095_v48 }
 0x353   :  { %3033 = vmatpush3.bf16.msra.mxu1 %v3032_v49  ;;  %v2089_v56 = vand.u32 4294901760, %v2088_v50  ;;  %2882 = vmatprep.mubr.msk.f32.mxu1 %vm3201_vm3, %v3202_v63 }
 0x354   :  { %3034 = vmatprep.subr.bf16.mxu1 %v3200_v62 }
 0x355   :  { %v3035_v57 = vpack.c.bf16 %v2096_v55, %v2089_v56 }
 0x357   :  { %3036 = vmatpush3.bf16.msra.mxu1 %v3035_v57 }
 0x358   :  { %3037 = vmatprep.subr.bf16.mxu1 %v3200_v62 }
 0x35a   :  { %2883 = vmatmul.mubr.f32.vlgmr.msra.gmra.mrb[4].mxu1 %v3522_v18 }
 0x35b   :  { %3039 = vmatpush3.bf16.msra.mxu1 %v3038_v35  ;;  %2893 = vmatprep.mubr.msk.f32.mxu1 %vm3201_vm3, %v3202_v63 }
 0x35c   :  { %3040 = vmatprep.subr.bf16.mxu1 %v3200_v62 }
 0x35f   :  { %3042 = vmatpush3.bf16.msra.mxu1 %v3041_v47 }
 0x360   :  { %3043 = vmatprep.subr.bf16.mxu1 %v3200_v62 }
 0x362   :  { %2894 = vmatmul.mubr.f32.vlgmr.msra.gmra.mrb[4].mxu1 %v2061_v19 }
 0x363   :  { %3045 = vmatpush3.bf16.msra.mxu1 %v3026_v27  ;;  %2904 = vmatprep.mubr.msk.f32.mxu1 %vm3201_vm3, %v3202_v63 }
 0x364   :  { %3046 = vmatprep.subr.bf16.mxu1 %v3200_v62 }
 0x367   :  { %3048 = vmatpush3.bf16.msra.mxu1 %v3029_v38 }
 0x368   :  { %3049 = vmatprep.subr.bf16.mxu1 %v3200_v62 }
 0x36a   :  { %2905 = vmatmul.mubr.f32.vlgmr.msra.gmra.mrb[4].mxu1 %v2062_v23 }
 0x36b   :  { %3051 = vmatpush3.bf16.msra.mxu1 %v3050_v41  ;;  %2915 = vmatprep.mubr.msk.f32.mxu1 %vm3201_vm3, %v3202_v63 }
 0x36c   :  { %3052 = vmatprep.subr.bf16.mxu1 %v3200_v62 }
 0x36f   :  { %3054 = vmatpush3.bf16.msra.mxu1 %v3053_v51 }
 0x370   :  { %3055 = vmatprep.subr.bf16.mxu1 %v3200_v62 }
 0x372   :  { %2916 = vmatmul.mubr.f32.vlgmr.msra.gmra.mrb[4].mxu1 %v3522_v18 }
 0x373   :  { %3057 = vmatpush3.bf16.msra.mxu1 %v3026_v27  ;;  %2926 = vmatprep.mubr.msk.f32.mxu1 %vm3201_vm3, %v3202_v63 }
 0x374   :  { %3058 = vmatprep.subr.bf16.mxu1 %v3200_v62 }
 0x377   :  { %3060 = vmatpush3.bf16.msra.mxu1 %v3029_v38 }
 0x37a   :  { %2927 = vmatmul.mubr.f32.vlgmr.msra.gmra.mrb[4].mxu1 %v3522_v18 }
 0x44d   :  { %v2472_v52 = vpop.f32.mrb[4].mxu1 }
 0x44e   :  { %v3073_v0 = vadd.f32 %v2472_v52, %v1987_v54  ;;  %v2928_v1 = vpop.f32.mrb[5].mxu1 }
 0x450   :  { %2476 = vst [vmem:[#allocation3] sm:$0x1] %v3073_v0 }
 0x451   :  { %3186 = shalt.err (!%p3183_p4)
}
 0x452   :  { %s3187_s14 = scalar_lea.hbm %s3570_s9, 16 }
 0x453   :  { %p3188_p5 = scmp.ne.s32.totalorder %s3570_s9, %s3187_s14  ;;  %p3191_p6 = scmp.lt.u32.totalorder %s3187_s14, %s3570_s9 }
 0x455   :  { %p3193_p7 = pnand %p3191_p6, %p3188_p5 }
 0x457   :  { %3196 = shalt.err (!%p3193_p7)
}
 0x458   :  { %2486 = dma.vmem_to_hbm [thread:$0]  %s2484_s30, 16, %s3570_s9, [#allocation4]  }
 0x459   :  { %3197 = dma.done.wait [#allocation4], 16  }
 0x45a   :  { %3198 = vsyncadd [#allocation4], 4294967280 }
 0x45b   :  { %2490 = vsyncpa [#allocation4], 1 }

</bundles_post_ra>
